<compile_context>
chip_gen: v6e
topology: v6e:2x2x1
jax: 0.10.0
libtpu: 0.0.40
codegen_flags: <defaults>
</compile_context>

<pallas_src>
import functools

import jax
import jax.numpy as jnp
from jax import lax
from jax.experimental import pallas as pl
from jax.experimental.pallas import tpu as pltpu


def _round_up(v, m):
    return ((v + m - 1) // m) * m


def _nabla2d_scatter_kernel(edata_ref, dst_ref, out_ref, acc_ref, *, n_tile):
    """One (N_TILE nodes) x (E_TILE edges) block of the fused masked scatter-mean."""
    n = pl.program_id(0)          # node-tile index  ("parallel")
    k = pl.program_id(1)          # edge-tile index  ("arbitrary" reduction axis)

    @pl.when(k == 0)
    def _init():
        acc_ref[...] = jnp.zeros_like(acc_ref)

    e = edata_ref[...]                                   # (8, E_TILE) f32
    # rows: 0 xj_x, 1 xj_y, 2 xi_x, 3 xi_y, 4 rinv_x, 5 rinv_y, 6 mask_x, 7 mask_y
    msg = (e[0:2, :] - e[2:4, :]) * e[4:6, :]            # (2, E_TILE): msg_x, msg_y
    lhs = jnp.concatenate([msg, e[6:8, :]], axis=0)      # (4, E_TILE): msg_x, msg_y, mask_x, mask_y

    # One-hot destination incidence for this block: oh[e, c] = 1 iff dst[e] == n*N_TILE + c.
    # Padded edges have dst == 0 but msg == mask == 0, so they contribute nothing.
    dst = dst_ref[...]                                   # (E_TILE, 1) int32
    col = lax.broadcasted_iota(jnp.int32, (dst.shape[0], n_tile), 1) + n * n_tile
    oh = (col == dst).astype(jnp.float32)                # (E_TILE, N_TILE), exact 0/1

    # Single fused scatter matmul; result rows are [sum_x, sum_y, cnt_x, cnt_y].
    acc_ref[...] += jnp.dot(lhs, oh, preferred_element_type=jnp.float32)

    @pl.when(k == pl.num_programs(1) - 1)
    def _finalize():
        sum_x = acc_ref[0:1, :]
        sum_y = acc_ref[1:2, :]
        cnt_x = acc_ref[2:3, :]
        cnt_y = acc_ref[3:4, :]
        dx = jnp.where(cnt_x > 0.0, sum_x / jnp.maximum(cnt_x, 1.0), 0.0)
        dy = jnp.where(cnt_y > 0.0, sum_y / jnp.maximum(cnt_y, 1.0), 0.0)
        out_ref[...] = dx + dy


class Nabla2DProductOperator:
    """JAX/Pallas port of the PyTorch Nabla2DProductOperator (no learnable parameters)."""

    def __init__(self, delta_x, delta_y, index_derivative_node=0,
                 index_derivative_x=0, index_derivative_y=1,
                 e_tile=256, n_tile=128):
        self.delta_x = delta_x              # stored, unused in forward (as in PyTorch)
        self.delta_y = delta_y
        self.index_derivative_node = index_derivative_node
        self.index_derivative_x = index_derivative_x
        self.index_derivative_y = index_derivative_y
        self.e_tile = e_tile                # contraction tile (multiple of 256 for v6e/v7x MXU)
        self.n_tile = n_tile                # output node tile (multiple of 128, lane-dense)

    def __call__(self, x, edge_index, edge_attr):
        # x: (N, F) float32, edge_index: (2, E) int, edge_attr: (E, >=2) float32
        x = jnp.asarray(x, jnp.float32)
        edge_index = jnp.asarray(edge_index, jnp.int32)
        edge_attr = jnp.asarray(edge_attr, jnp.float32)

        N = x.shape[0]
        E = edge_index.shape[1]
        e_tile, n_tile = self.e_tile, self.n_tile
        E_pad = _round_up(max(E, 1), e_tile)
        N_pad = _round_up(max(N, 1), n_tile)

        src, dst = edge_index[0], edge_index[1]
        ix, iy = self.index_derivative_x, self.index_derivative_y

        ax, ay = edge_attr[:, ix], edge_attr[:, iy]
        mask_x = ax != 0.0                              # PyTorch: edge_attr[:, ix] != 0
        mask_y = ay != 0.0                              # PyTorch: edge_attr[:, iy] != 0
        rinv_x = jnp.where(mask_x, 1.0 / jnp.where(mask_x, ax, 1.0), 0.0)
        rinv_y = jnp.where(mask_y, 1.0 / jnp.where(mask_y, ay, 1.0), 0.0)

        # O(E) endpoint gathers (x_j, x_i) via XLA's native gather; packed sublane-dense.
        rows = jnp.stack([x[src, ix], x[src, iy], x[dst, ix], x[dst, iy],
                          rinv_x, rinv_y,
                          mask_x.astype(jnp.float32), mask_y.astype(jnp.float32)], axis=0)
        edata = jnp.zeros((8, E_pad), jnp.float32).at[:, :E].set(rows)     # padded edges -> all-zero
        dst_col = jnp.zeros((E_pad, 1), jnp.int32).at[:E, 0].set(dst)

        grid = (N_pad // n_tile, E_pad // e_tile)
        kernel = functools.partial(_nabla2d_scatter_kernel, n_tile=n_tile)

        out = pl.pallas_call(
            kernel,
            out_shape=jax.ShapeDtypeStruct((1, N_pad), jnp.float32),
            grid_spec=pltpu.PrefetchScalarGridSpec(
                num_scalar_prefetch=0,
                grid=grid,
                in_specs=[
                    pl.BlockSpec((8, e_tile), lambda n, k: (0, k)),       # edge operand tile
                    pl.BlockSpec((e_tile, 1), lambda n, k: (k, 0)),       # dst index tile (column)
                ],
                out_specs=pl.BlockSpec((1, n_tile), lambda n, k: (0, n)),
                scratch_shapes=[pltpu.VMEM((4, n_tile), jnp.float32)],    # [sum_x, sum_y, cnt_x, cnt_y]
            ),
            compiler_params=pltpu.CompilerParams(
                dimension_semantics=("parallel", "arbitrary"),
                vmem_limit_bytes=32 * 1024 * 1024,
            ),
        )(edata, dst_col)
        return out[0, :N]  # (N,)


def _reference_forward(x, edge_index, edge_attr):
    """Pure-JAX reference with the same semantics (masked scatter-mean)."""
    N = x.shape[0]
    src, dst = edge_index[0], edge_index[1]

    def deriv(idx):
        attr = edge_attr[:, idx]
        mask = attr != 0
        xj = x[src, idx]
        xi = x[dst, idx]
        msg = jnp.where(mask, (xj - xi) / jnp.where(mask, attr, 1.0), 0.0)
        sums = jax.ops.segment_sum(msg, dst, num_segments=N)
        cnt = jax.ops.segment_sum(mask.astype(jnp.float32), dst, num_segments=N)
        return jnp.where(cnt > 0, sums / jnp.maximum(cnt, 1.0), 0.0)

    return deriv(0) + deriv(1)


if __name__ == "__main__":
    # Small regular 16x16 grid graph (Darcy-style), bidirectional 4-neighbour edges.
    nx_, ny_ = 16, 16
    N = nx_ * ny_
    delta_x = 1.0 / (nx_ - 1)
    delta_y = 1.0 / (ny_ - 1)

    key = jax.random.PRNGKey(0)
    x = jax.random.normal(key, (N, 2), dtype=jnp.float32)  # node features: columns 0 (vx), 1 (vy)

    def nid(i, j):
        return i * ny_ + j

    srcs, dsts, attrs = [], [], []
    for i in range(nx_):
        for j in range(ny_):
            if i + 1 < nx_:  # edges along x: edge_attr = (dx, 0)
                srcs += [nid(i, j), nid(i + 1, j)]
                dsts += [nid(i + 1, j), nid(i, j)]
                attrs += [[delta_x, 0.0], [-delta_x, 0.0]]
            if j + 1 < ny_:  # edges along y: edge_attr = (0, dy)
                srcs += [nid(i, j), nid(i, j + 1)]
                dsts += [nid(i, j + 1), nid(i, j)]
                attrs += [[0.0, delta_y], [0.0, -delta_y]]

    edge_index = jnp.array([srcs, dsts], dtype=jnp.int32)   # (2, E) = (2, 960)
    edge_attr = jnp.array(attrs, dtype=jnp.float32)         # (E, 2)

    op = Nabla2DProductOperator(delta_x, delta_y)
    nabla2d = jax.block_until_ready(op(x, edge_index, edge_attr))

    ref = _reference_forward(x, edge_index, edge_attr)
    assert nabla2d.shape == (N,)
    err = float(jnp.max(jnp.abs(nabla2d - ref)))
    assert jnp.allclose(nabla2d, ref, atol=1e-4, rtol=1e-4), err

    print("KERNEL_OK")
</pallas_src>

<mosaic_0001>
module attributes {stable_mosaic.version = 11 : i64} {
  func.func @_nabla2d_scatter_kernel(%arg0: i32, %arg1: i32, %arg2: memref<8x256xf32, #tpu.memory_space<vmem>>, %arg3: memref<256x1xi32, #tpu.memory_space<vmem>>, %arg4: memref<1x128xf32, #tpu.memory_space<vmem>>, %arg5: memref<4x128xf32, #tpu.memory_space<vmem>>) attributes {dimension_semantics = [#tpu.dimension_semantics<parallel>, #tpu.dimension_semantics<arbitrary>], iteration_bounds = array<i64: 2, 4>, scalar_prefetch = 0 : i64, scratch_operands = 1 : i64, tpu.core_type = #tpu.core_type<tc>, window_params = [{transform_indices = @transform_0, window_bounds = array<i64: 8, 256>}, {transform_indices = @transform_1, window_bounds = array<i64: 256, 1>}, {transform_indices = @transform_2, window_bounds = array<i64: 1, 128>}]} {
    %c0_i32 = arith.constant 0 : i32
    %0 = arith.cmpi eq, %arg1, %c0_i32 : i32
    %1 = arith.extui %0 : i1 to i32
    %c0_i32_0 = arith.constant 0 : i32
    %2 = arith.cmpi ne, %1, %c0_i32_0 : i32
    scf.if %2 {
      %cst_9 = arith.constant 0.000000e+00 : f32
      %27 = vector.broadcast %cst_9 : f32 to vector<4x128xf32>
      %c0_10 = arith.constant 0 : index
      %c0_11 = arith.constant 0 : index
      %28 = vector.load %arg5[%c0_10, %c0_11] : memref<4x128xf32, #tpu.memory_space<vmem>>, vector<4x128xf32>
      tpu.vector_store %arg5[%c0_10, %c0_11], %27 {strides = array<i32>} : memref<4x128xf32, #tpu.memory_space<vmem>>, vector<4x128xf32>,
    } else {
    }
    %c0 = arith.constant 0 : index
    %c0_1 = arith.constant 0 : index
    %3 = vector.load %arg2[%c0, %c0_1] : memref<8x256xf32, #tpu.memory_space<vmem>>, vector<8x256xf32>
    %4 = vector.extract_strided_slice %3 {offsets = [0, 0], sizes = [2, 256], strides = [1, 1]} : vector<8x256xf32> to vector<2x256xf32>
    %5 = vector.extract_strided_slice %3 {offsets = [2, 0], sizes = [2, 256], strides = [1, 1]} : vector<8x256xf32> to vector<2x256xf32>
    %6 = arith.subf %4, %5 : vector<2x256xf32>
    %7 = vector.extract_strided_slice %3 {offsets = [4, 0], sizes = [2, 256], strides = [1, 1]} : vector<8x256xf32> to vector<2x256xf32>
    %8 = arith.mulf %6, %7 : vector<2x256xf32>
    %9 = vector.extract_strided_slice %3 {offsets = [6, 0], sizes = [2, 256], strides = [1, 1]} : vector<8x256xf32> to vector<2x256xf32>
    %10 = tpu.concatenate %8, %9 in 0 : vector<2x256xf32>, vector<2x256xf32> -> vector<4x256xf32>
    %c0_2 = arith.constant 0 : index
    %c0_3 = arith.constant 0 : index
    %11 = vector.load %arg3[%c0_2, %c0_3] : memref<256x1xi32, #tpu.memory_space<vmem>>, vector<256x1xi32>
    %12 = tpu.iota {dimensions = array<i32: 1>} : vector<256x128xi32>
    %c128_i32 = arith.constant 128 : i32
    %13 = arith.muli %arg0, %c128_i32 : i32
    %14 = vector.broadcast %13 : i32 to vector<256x128xi32>
    %15 = arith.addi %12, %14 : vector<256x128xi32>
    %16 = vector.broadcast %11 : vector<256x1xi32> to vector<256x128xi32>
    %17 = arith.cmpi eq, %15, %16 : vector<256x128xi32>
    %18 = arith.extui %17 : vector<256x128xi1> to vector<256x128xi32>
    %19 = arith.sitofp %18 : vector<256x128xi32> to vector<256x128xf32>
    %c0_4 = arith.constant 0 : index
    %c0_5 = arith.constant 0 : index
    %20 = vector.load %arg5[%c0_4, %c0_5] : memref<4x128xf32, #tpu.memory_space<vmem>>, vector<4x128xf32>
    %cst = arith.constant dense<0.000000e+00> : vector<4x128xf32>
    %21 = tpu.matmul %10, %19, %cst {dimension_numbers = #tpu.dot_dimension_numbers<[1], [0], [0], [1], [0, 0, 1, 1], [], []>} : vector<4x256xf32>, vector<256x128xf32>, vector<4x128xf32> -> vector<4x128xf32>
    %22 = arith.addf %20, %21 : vector<4x128xf32>
    %c0_6 = arith.constant 0 : index
    %c0_7 = arith.constant 0 : index
    %23 = vector.load %arg5[%c0_6, %c0_7] : memref<4x128xf32, #tpu.memory_space<vmem>>, vector<4x128xf32>
    tpu.vector_store %arg5[%c0_6, %c0_7], %22 {strides = array<i32>} : memref<4x128xf32, #tpu.memory_space<vmem>>, vector<4x128xf32>,
    %c3_i32 = arith.constant 3 : i32
    %24 = arith.cmpi eq, %arg1, %c3_i32 : i32
    %25 = arith.extui %24 : i1 to i32
    %c0_i32_8 = arith.constant 0 : i32
    %26 = arith.cmpi ne, %25, %c0_i32_8 : i32
    scf.if %26 {
      %c0_9 = arith.constant 0 : index
      %c0_10 = arith.constant 0 : index
      %27 = vector.load %arg5[%c0_9, %c0_10] : memref<4x128xf32, #tpu.memory_space<vmem>>, vector<1x128xf32>
      %c1 = arith.constant 1 : index
      %c0_11 = arith.constant 0 : index
      %28 = vector.load %arg5[%c1, %c0_11] : memref<4x128xf32, #tpu.memory_space<vmem>>, vector<1x128xf32>
      %c2 = arith.constant 2 : index
      %c0_12 = arith.constant 0 : index
      %29 = vector.load %arg5[%c2, %c0_12] : memref<4x128xf32, #tpu.memory_space<vmem>>, vector<1x128xf32>
      %c3 = arith.constant 3 : index
      %c0_13 = arith.constant 0 : index
      %30 = vector.load %arg5[%c3, %c0_13] : memref<4x128xf32, #tpu.memory_space<vmem>>, vector<1x128xf32>
      %cst_14 = arith.constant 0.000000e+00 : f32
      %31 = vector.broadcast %cst_14 : f32 to vector<1x128xf32>
      %32 = arith.cmpf ogt, %29, %31 : vector<1x128xf32>
      %cst_15 = arith.constant 1.000000e+00 : f32
      %33 = vector.broadcast %cst_15 : f32 to vector<1x128xf32>
      %34 = arith.maximumf %29, %33 : vector<1x128xf32>
      %35 = arith.divf %27, %34 : vector<1x128xf32>
      %cst_16 = arith.constant 0.000000e+00 : f32
      %36 = vector.broadcast %cst_16 : f32 to vector<1x128xf32>
      %37 = arith.select %32, %35, %36 : vector<1x128xi1>, vector<1x128xf32>
      %cst_17 = arith.constant 0.000000e+00 : f32
      %38 = vector.broadcast %cst_17 : f32 to vector<1x128xf32>
      %39 = arith.cmpf ogt, %30, %38 : vector<1x128xf32>
      %cst_18 = arith.constant 1.000000e+00 : f32
      %40 = vector.broadcast %cst_18 : f32 to vector<1x128xf32>
      %41 = arith.maximumf %30, %40 : vector<1x128xf32>
      %42 = arith.divf %28, %41 : vector<1x128xf32>
      %cst_19 = arith.constant 0.000000e+00 : f32
      %43 = vector.broadcast %cst_19 : f32 to vector<1x128xf32>
      %44 = arith.select %39, %42, %43 : vector<1x128xi1>, vector<1x128xf32>
      %45 = arith.addf %37, %44 : vector<1x128xf32>
      %c0_20 = arith.constant 0 : index
      %c0_21 = arith.constant 0 : index
      %46 = vector.load %arg4[%c0_20, %c0_21] : memref<1x128xf32, #tpu.memory_space<vmem>>, vector<1x128xf32>
      tpu.vector_store %arg4[%c0_20, %c0_21], %45 {strides = array<i32>} : memref<1x128xf32, #tpu.memory_space<vmem>>, vector<1x128xf32>,
    } else {
    }
    return
  }
  func.func @transform_0(%arg0: i32, %arg1: i32) -> (i32, i32) {
    %c0_i32 = arith.constant 0 : i32
    %c0_i32_0 = arith.constant 0 : i32
    return %c0_i32, %arg1 : i32, i32
  }
  func.func @transform_1(%arg0: i32, %arg1: i32) -> (i32, i32) {
    %c0_i32 = arith.constant 0 : i32
    %c0_i32_0 = arith.constant 0 : i32
    return %arg1, %c0_i32 : i32, i32
  }
  func.func @transform_2(%arg0: i32, %arg1: i32) -> (i32, i32) {
    %c0_i32 = arith.constant 0 : i32
    %c0_i32_0 = arith.constant 0 : i32
    return %c0_i32, %arg0 : i32, i32
  }
}

</mosaic_0001>

<bundles_post_ra>
// kernel: tpu_custom_call.1
= control target key start
LH: loop header
LB: loop body
LE: loop exit
PB: predicated region body
PF: predicated region fallthrough
CT: control target
= control target key end

     0   :  { %7 = vsyncpa [#allocation4], 0  ;;  %s1160_s0 = inlined_call_operand.vmem [shape: f32[8,1024], index: 0, kind: input, shape index: {}]   ;;  %s1161_s1 = inlined_call_operand.vmem [shape: s32[1024,1], index: 1, kind: input, shape index: {}]   ;;  %s1162_s2 = inlined_call_operand.hbm [shape: f32[1,256], index: 2, kind: output, shape index: {}]  }
   0x1   :  { %9 = vsyncpa [#allocation4 + $0x1], 0  ;;  %s921_s9 = smov 0   ;;  %s923_s10 = smov 0  }
   0x2   :  { %s925_s11 = smov 0   ;;  %s927_s12 = smov 0  }
   0x3   :  { %s929_s13 = smov 0   ;;  %s931_s14 = smov 0  }
   0x4   :  { %s933_s15 = smov 0   ;;  %s935_s16 = smov 0  }
   0x5 LB: > { %s614_s17 = sadd.s32 4294967295, %s900_s16   ;;  %s615_s18 = sadd.s32 4294967294, %s900_s16   ;;  %s900_s16 = sphi %s935_s16, %s15_s16   ;;  %s896_s15 = sphi %s933_s15, %s1171_s15   ;;  %s892_s14 = sphi %s931_s14, %s1170_s14   ;;  %s888_s13 = sphi %s929_s13, %s1169_s13   ;;  %s884_s12 = sphi %s927_s12, %s1168_s12   ;;  %s880_s11 = sphi %s925_s11, %s1167_s11   ;;  %s876_s10 = sphi %s923_s10, %s1166_s10   ;;  %s872_s9 = sphi %s921_s9, %s1165_s9  }
   0x6   : > { %s24_s19 = sadd.s32 1, %s892_s14  ;;  %s27_s20 = sadd.s32 1, %s896_s15 }
   0x7   : > { %p25_p0 = scmp.ge.s32.totalorder %s24_s19, 4  ;;  %p96_p1 = scmp.ne.s32.totalorder %s880_s11, %s876_s10 }
   0x8   : > { %p97_p2 = scmp.eq.s32.totalorder %s614_s17, 7  ;;  %p102_p4 = scmp.ne.s32.totalorder %s876_s10, %s872_s9 }
   0x9   : > { %s1173_s19 = smov (%p25_p0, %s24_s19), 0  ;;  %s1175_s20 = smov (!%p25_p0, %s27_s20), %s896_s15 }
   0xa   : > { %p970_p3 = por %p97_p2, %p96_p1  ;;  %p29_p5 = scmp.ge.s32.totalorder %s1175_s20, 2 }
   0xb   : > { %p103_p6 = scmp.eq.s32.totalorder %s615_s18, 7  ;;  %p618_p7 = scmp.ge.s32.totalorder %s900_s16, 1 }
   0xc   : > { %p139_p8 = scmp.lt.s32.totalorder %s900_s16, 9  ;;  %s1177_s20 = smov (%p29_p5, %s1175_s20), 0 }
   0xd   : > { %p980_p9 = por %p103_p6, %p102_p4  ;;  %s83_s23 = ssub.s32 %s896_s15, %s1177_s20 }
   0xe   : > { %p140_p10 = pnand %p618_p7, %p139_p8  ;;  %s86_s24 = sadd.s32 1, %s880_s11 }
   0xf   : > { %p84_p11 = scmp.eq.s32.totalorder %s83_s23, 0  ;;  %s163_s26 = sand.u32 (!%p140_p10), 1, %s876_s10  }
  0x10   : > { %143 = sbr.rel (%p140_p10) target bundleno = 473 (0x1d9), region = 28  ;;  %s619_s27 = sshll.u32 (!%p140_p10), %s884_s12, 1 }
  0x11   : > { %s988_s25 = scalar_select %p84_p11, %s880_s11, %s86_s24  }
  0x12   : > { %p166_p12 = scmp.lt.s32.totalorder (!%p140_p10), %s619_s27, 7  ;;  %s621_s28 = sshll.u32 (!%p140_p10), %s884_s12, 5 }
  0x13   : > { %p172_p13 = scmp.lt.s32.totalorder (!%p140_p10), %s621_s28, 127  ;;  %s1005_s17 = scalar_lea.vmem (!%p140_p10), [#allocation3], %s163_s26 }
  0x14   : > { %p623_p0 = scmp.ne.s32.totalorder (!%p140_p10), %s884_s12, 0 }
  0x15   : > { %s1179_s27 = smov (!%p166_p12, %s619_s27), 7  ;;  %s1181_s28 = smov (!%p172_p13, %s621_s28), 127 }
  0x16   : > { %s620_s29 = sshll.u32 %s1179_s27, 3  ;;  %s622_s5 = sshll.u32 %s1181_s28, 3 }
  0x17   : > { %s996_s4 = scalar_lea.vmem %s1160_s0, %s620_s29  ;;  %s1001_s8 = scalar_lea.vmem %s1161_s1, %s622_s5 }
  0x18   : > { %180 = sbr.rel (%p623_p0) target bundleno = 31 (0x1f), region = 32 }
  0x1d   : > { %v902_v0 = vmov 0.0  }
  0x1e   : > { %181 = vst [vmem:[#allocation2] sm:$0xf] %v902_v0 }
  0x1f PF: > { %v232_v1 = vld [vmem:[%s1001_s8 + $0xf8] sm:$0xff]  ;;  %v231_v2 = vld [vmem:[%s1001_s8 + $0xf0] sm:$0xff]  ;;  %v903_v3 = vmov 0   ;;  %v230_v6 = vld [vmem:[%s1001_s8 + $0xe8] sm:$0xff]  ;;  %vm198_vm0 = vcmask 1041408   ;;  %v233_v40 = vlaneseq  ;;  %s624_s18 = sshll.u32 %s888_s13, 7 }
  0x20   : > { %803 = vset.pattern.permute.xlu1 %v903_v3  ;;  %802 = vset.pattern.permute.xlu0 %v903_v3  ;;  %v216_v4 = vld [vmem:[%s1001_s8 + $0x78] sm:$0xff]  ;;  %v215_v5 = vld [vmem:[%s1001_s8 + $0x70] sm:$0xff]  ;;  %v214_v7 = vld [vmem:[%s1001_s8 + $0x68] sm:$0xff]  ;;  %v236_v42 = vstv %s624_s18  ;;  %v904_v46 = vmov 1.0   ;;  %p689_p1 = scmp.ne.s32.totalorder %s884_s12, 3 }
  0x21   : > { %332 = vperm.xlu0 %802, %v232_v1   ;;  %329 = vperm.xlu1 %803, %v231_v2   ;;  %v229_v8 = vld [vmem:[%s1001_s8 + $0xe0] sm:$0xff]  ;;  %v228_v10 = vld [vmem:[%s1001_s8 + $0xd8] sm:$0xff]  ;;  %v227_v12 = vld [vmem:[%s1001_s8 + $0xd0] sm:$0xff]  ;;  %v234_v41 = vand.u32 127, %v233_v40 }
  0x22   : > { %v213_v9 = vld [vmem:[%s1001_s8 + $0x60] sm:$0xff]  ;;  %v212_v11 = vld [vmem:[%s1001_s8 + $0x58] sm:$0xff]  ;;  %v211_v13 = vld [vmem:[%s1001_s8 + $0x50] sm:$0xff] }
  0x23   : > { %v226_v14 = vld [vmem:[%s1001_s8 + $0xc8] sm:$0xff]  ;;  %v225_v16 = vld [vmem:[%s1001_s8 + $0xc0] sm:$0xff]  ;;  %v224_v18 = vld [vmem:[%s1001_s8 + $0xb8] sm:$0xff]  ;;  %v1043_v43 = vadd.s32 %v236_v42, %v234_v41 }
  0x24   : > { %v210_v15 = vld [vmem:[%s1001_s8 + $0x48] sm:$0xff]  ;;  %v209_v17 = vld [vmem:[%s1001_s8 + $0x40] sm:$0xff]  ;;  %v208_v19 = vld [vmem:[%s1001_s8 + $0x38] sm:$0xff] }
  0x25   : > { %284 = vperm.xlu0 %802, %v216_v4   ;;  %281 = vperm.xlu1 %803, %v215_v5   ;;  %v223_v20 = vld [vmem:[%s1001_s8 + $0xb0] sm:$0xff]  ;;  %v222_v22 = vld [vmem:[%s1001_s8 + $0xa8] sm:$0xff]  ;;  %v221_v24 = vld [vmem:[%s1001_s8 + $0xa0] sm:$0xff] }
  0x26   : > { %v207_v21 = vld [vmem:[%s1001_s8 + $0x30] sm:$0xff]  ;;  %v206_v23 = vld [vmem:[%s1001_s8 + $0x28] sm:$0xff]  ;;  %v205_v25 = vld [vmem:[%s1001_s8 + $0x20] sm:$0xff] }
  0x27   : > { %v220_v26 = vld [vmem:[%s1001_s8 + $0x98] sm:$0xff]  ;;  %v219_v28 = vld [vmem:[%s1001_s8 + $0x90] sm:$0xff]  ;;  %v183_v30 = vld [vmem:[%s996_s4 + $0x8] sm:$0xff] }
  0x28   : > { %v204_v27 = vld [vmem:[%s1001_s8 + $0x18] sm:$0xff]  ;;  %v203_v29 = vld [vmem:[%s1001_s8 + $0x10] sm:$0xff]  ;;  %v187_v31 = vrot.slane %v183_v30, 2  ;;  %v218_v32 = vld [vmem:[%s1001_s8 + $0x88] sm:$0xff]  ;;  %v193_v35 = vrot.slane %v183_v30, 4 }
  0x29   : > { %326 = vperm.xlu0 %802, %v230_v6   ;;  %278 = vperm.xlu1 %803, %v214_v7   ;;  %v202_v33 = vld [vmem:[%s1001_s8 + $0x8] sm:$0xff]  ;;  %v217_v37 = vld [vmem:[%s1001_s8 + $0x80] sm:$0xff] }
  0x2a   : > { %v191_v34 = vsub.f32 %v183_v30, %v187_v31  ;;  %v201_v38 = vld [vmem:[%s1001_s8] sm:$0xff] }
  0x2b   : > { %v182_v5 = vld [vmem:[%s996_s4] sm:$0xff] }
  0x2c   : > { %v197_v36 = vmul.f32 %v193_v35, %v191_v34 }
  0x2d   : > { %323 = vperm.xlu0 %802, %v229_v8   ;;  %275 = vperm.xlu1 %803, %v213_v9   ;;  %v186_v8 = vrot.slane %v182_v5, 2 }
  0x2e   : > { %v200_v39 = vsel %vm198_vm0, %v197_v36, %v193_v35 }
  0x2f   : > { %495 = vmatprep.mubr.f32.mxu0 %v200_v39 }
  0x31   : > { %320 = vperm.xlu0 %802, %v228_v10   ;;  %272 = vperm.xlu1 %803, %v212_v11   ;;  %v190_v11 = vsub.f32 %v182_v5, %v186_v8 }
  0x35   : > { %317 = vperm.xlu0 %802, %v227_v12   ;;  %269 = vperm.xlu1 %803, %v211_v13   ;;  %v192_v12 = vrot.slane %v182_v5, 4 }
  0x39   : > { %314 = vperm.xlu0 %802, %v226_v14   ;;  %266 = vperm.xlu1 %803, %v210_v15   ;;  %v196_v15 = vmul.f32 %v192_v12, %v190_v11 }
  0x3d   : > { %311 = vperm.xlu0 %802, %v225_v16   ;;  %263 = vperm.xlu1 %803, %v209_v17  }
  0x41   : > { %308 = vperm.xlu0 %802, %v224_v18   ;;  %260 = vperm.xlu1 %803, %v208_v19   ;;  %v199_v18 = vsel %vm198_vm0, %v196_v15, %v192_v12 }
  0x45   : > { %305 = vperm.xlu0 %802, %v223_v20   ;;  %257 = vperm.xlu1 %803, %v207_v21   ;;  %v430_v20 = vld [vmem:[#allocation2] sm:$0xf] }
  0x49   : > { %302 = vperm.xlu0 %802, %v222_v22   ;;  %254 = vperm.xlu1 %803, %v206_v23  }
  0x4d   : > { %299 = vperm.xlu0 %802, %v221_v24   ;;  %251 = vperm.xlu1 %803, %v205_v25  }
  0x51   : > { %296 = vperm.xlu0 %802, %v220_v26   ;;  %248 = vperm.xlu1 %803, %v204_v27  }
  0x55   : > { %293 = vperm.xlu0 %802, %v219_v28   ;;  %245 = vperm.xlu1 %803, %v203_v29  }
  0x59   : > { %290 = vperm.xlu0 %802, %v218_v32   ;;  %242 = vperm.xlu1 %803, %v202_v33  }
  0x5d   : > { %287 = vperm.xlu0 %802, %v217_v37   ;;  %239 = vperm.xlu1 %803, %v201_v38  }
  0x9c   : > { %v333_v44 = vpop.permute.xlu0 %332  ;;  %v330_v45 = vpop.permute.xlu1 %329 }
  0x9d   : > { %vm365_vm1 = vcmp.eq.s32.totalorder %v1043_v43, %v333_v44  ;;  %vm364_vm3 = vcmp.eq.s32.totalorder %v1043_v43, %v330_v45 }
  0x9e   : > { %693 = vmatprep.subr.msk.mxu0 %vm365_vm1, %v904_v46 }
  0xa0   : > { %v285_v47 = vpop.permute.xlu0 %284  ;;  %v282_v48 = vpop.permute.xlu1 %281 }
  0xa1   : > { %vm349_vm2 = vcmp.eq.s32.totalorder %v1043_v43, %v285_v47  ;;  %vm348_vm4 = vcmp.eq.s32.totalorder %v1043_v43, %v282_v48 }
  0xa2   : > { %694 = vmatpush3.msk.msra.mxu0 %vm349_vm2, %v904_v46 }
  0xa3   : > { %695 = vmatprep.subr.msk.mxu0 %vm364_vm3, %v904_v46 }
  0xa4   : > { %v327_v49 = vpop.permute.xlu0 %326  ;;  %696 = vmatpush3.msk.msra.mxu0 %vm348_vm4, %v904_v46  ;;  %v279_v50 = vpop.permute.xlu1 %278 }
  0xa5   : > { %vm363_vm5 = vcmp.eq.s32.totalorder %v1043_v43, %v327_v49  ;;  %vm347_vm6 = vcmp.eq.s32.totalorder %v1043_v43, %v279_v50 }
  0xa6   : > { %697 = vmatprep.subr.msk.mxu0 %vm363_vm5, %v904_v46 }
  0xa7   : > { %698 = vmatpush3.msk.msra.mxu0 %vm347_vm6, %v904_v46 }
  0xa8   : > { %v324_v51 = vpop.permute.xlu0 %323  ;;  %v276_v52 = vpop.permute.xlu1 %275 }
  0xa9   : > { %vm362_vm7 = vcmp.eq.s32.totalorder %v1043_v43, %v324_v51  ;;  %vm346_vm8 = vcmp.eq.s32.totalorder %v1043_v43, %v276_v52 }
  0xaa   : > { %699 = vmatprep.subr.msk.mxu0 %vm362_vm7, %v904_v46 }
  0xab   : > { %700 = vmatpush3.msk.msra.mxu0 %vm346_vm8, %v904_v46 }
  0xac   : > { %v321_v53 = vpop.permute.xlu0 %320  ;;  %v273_v54 = vpop.permute.xlu1 %272 }
  0xad   : > { %vm361_vm9 = vcmp.eq.s32.totalorder %v1043_v43, %v321_v53  ;;  %vm345_vm10 = vcmp.eq.s32.totalorder %v1043_v43, %v273_v54 }
  0xae   : > { %701 = vmatprep.subr.msk.mxu0 %vm361_vm9, %v904_v46 }
  0xaf   : > { %702 = vmatpush3.msk.msra.mxu0 %vm345_vm10, %v904_v46 }
  0xb0   : > { %v318_v55 = vpop.permute.xlu0 %317  ;;  %v270_v56 = vpop.permute.xlu1 %269 }
  0xb1   : > { %vm360_vm11 = vcmp.eq.s32.totalorder %v1043_v43, %v318_v55  ;;  %vm344_vm12 = vcmp.eq.s32.totalorder %v1043_v43, %v270_v56 }
  0xb2   : > { %703 = vmatprep.subr.msk.mxu0 %vm360_vm11, %v904_v46 }
  0xb3   : > { %704 = vmatpush3.msk.msra.mxu0 %vm344_vm12, %v904_v46 }
  0xb4   : > { %v315_v57 = vpop.permute.xlu0 %314  ;;  %v267_v58 = vpop.permute.xlu1 %266 }
  0xb5   : > { %vm359_vm13 = vcmp.eq.s32.totalorder %v1043_v43, %v315_v57  ;;  %vm343_vm14 = vcmp.eq.s32.totalorder %v1043_v43, %v267_v58 }
  0xb6   : > { %705 = vmatprep.subr.msk.mxu0 %vm359_vm13, %v904_v46 }
  0xb7   : > { %706 = vmatpush3.msk.msra.mxu0 %vm343_vm14, %v904_v46 }
  0xb8   : > { %v312_v59 = vpop.permute.xlu0 %311  ;;  %v264_v60 = vpop.permute.xlu1 %263 }
  0xb9   : > { %vm358_vm15 = vcmp.eq.s32.totalorder %v1043_v43, %v312_v59  ;;  %vm342_vm1 = vcmp.eq.s32.totalorder %v1043_v43, %v264_v60 }
  0xba   : > { %707 = vmatprep.subr.msk.mxu0 %vm358_vm15, %v904_v46 }
  0xbb   : > { %708 = vmatpush3.msk.msra.mxu0 %vm342_vm1, %v904_v46 }
  0xbc   : > { %v309_v61 = vpop.permute.xlu0 %308  ;;  %v261_v62 = vpop.permute.xlu1 %260 }
  0xbd   : > { %vm357_vm2 = vcmp.eq.s32.totalorder %v1043_v43, %v309_v61  ;;  %vm341_vm3 = vcmp.eq.s32.totalorder %v1043_v43, %v261_v62 }
  0xbe   : > { %709 = vmatprep.subr.msk.mxu0 %vm357_vm2, %v904_v46 }
  0xbf   : > { %710 = vmatpush3.msk.msra.mxu0 %vm341_vm3, %v904_v46 }
  0xc0   : > { %v306_v63 = vpop.permute.xlu0 %305  ;;  %v258_v0 = vpop.permute.xlu1 %257 }
  0xc1   : > { %vm356_vm4 = vcmp.eq.s32.totalorder %v1043_v43, %v306_v63  ;;  %vm340_vm5 = vcmp.eq.s32.totalorder %v1043_v43, %v258_v0 }
  0xc2   : > { %711 = vmatprep.subr.msk.mxu0 %vm356_vm4, %v904_v46 }
  0xc3   : > { %712 = vmatpush3.msk.msra.mxu0 %vm340_vm5, %v904_v46 }
  0xc4   : > { %v303_v1 = vpop.permute.xlu0 %302  ;;  %v255_v2 = vpop.permute.xlu1 %254 }
  0xc5   : > { %vm355_vm6 = vcmp.eq.s32.totalorder %v1043_v43, %v303_v1  ;;  %vm339_vm7 = vcmp.eq.s32.totalorder %v1043_v43, %v255_v2 }
  0xc6   : > { %713 = vmatprep.subr.msk.mxu0 %vm355_vm6, %v904_v46 }
  0xc7   : > { %714 = vmatpush3.msk.msra.mxu0 %vm339_vm7, %v904_v46 }
  0xc8   : > { %v300_v3 = vpop.permute.xlu0 %299  ;;  %v252_v4 = vpop.permute.xlu1 %251 }
  0xc9   : > { %vm354_vm8 = vcmp.eq.s32.totalorder %v1043_v43, %v300_v3  ;;  %vm338_vm9 = vcmp.eq.s32.totalorder %v1043_v43, %v252_v4 }
  0xca   : > { %715 = vmatprep.subr.msk.mxu0 %vm354_vm8, %v904_v46 }
  0xcb   : > { %716 = vmatpush3.msk.msra.mxu0 %vm338_vm9, %v904_v46 }
  0xcc   : > { %v297_v6 = vpop.permute.xlu0 %296  ;;  %v249_v7 = vpop.permute.xlu1 %248 }
  0xcd   : > { %vm353_vm10 = vcmp.eq.s32.totalorder %v1043_v43, %v297_v6  ;;  %vm337_vm11 = vcmp.eq.s32.totalorder %v1043_v43, %v249_v7 }
  0xce   : > { %717 = vmatprep.subr.msk.mxu0 %vm353_vm10, %v904_v46 }
  0xcf   : > { %718 = vmatpush3.msk.msra.mxu0 %vm337_vm11, %v904_v46 }
  0xd0   : > { %v294_v9 = vpop.permute.xlu0 %293  ;;  %v246_v10 = vpop.permute.xlu1 %245 }
  0xd1   : > { %vm352_vm12 = vcmp.eq.s32.totalorder %v1043_v43, %v294_v9  ;;  %vm336_vm13 = vcmp.eq.s32.totalorder %v1043_v43, %v246_v10 }
  0xd2   : > { %719 = vmatprep.subr.msk.mxu0 %vm352_vm12, %v904_v46 }
  0xd3   : > { %720 = vmatpush3.msk.msra.mxu0 %vm336_vm13, %v904_v46 }
  0xd4   : > { %v291_v13 = vpop.permute.xlu0 %290  ;;  %v243_v14 = vpop.permute.xlu1 %242 }
  0xd5   : > { %vm351_vm14 = vcmp.eq.s32.totalorder %v1043_v43, %v291_v13  ;;  %vm335_vm15 = vcmp.eq.s32.totalorder %v1043_v43, %v243_v14 }
  0xd6   : > { %721 = vmatprep.subr.msk.mxu0 %vm351_vm14, %v904_v46 }
  0xd7   : > { %722 = vmatpush3.msk.msra.mxu0 %vm335_vm15, %v904_v46 }
  0xd8   : > { %v288_v16 = vpop.permute.xlu0 %287  ;;  %v240_v17 = vpop.permute.xlu1 %239 }
  0xd9   : > { %vm350_vm1 = vcmp.eq.s32.totalorder %v1043_v43, %v288_v16  ;;  %vm334_vm2 = vcmp.eq.s32.totalorder %v1043_v43, %v240_v17 }
  0xda   : > { %723 = vmatprep.subr.msk.mxu0 %vm350_vm1, %v904_v46 }
  0xdb   : > { %724 = vmatpush3.msk.msra.mxu0 %vm334_vm2, %v904_v46 }
  0xdc   : > { %496 = vmatmul.mubr.f32.vlgmr.msra.gmra.mxu0 %v199_v18 }
 0x19c   : > { %v725_v19 = vpop.f32.mrf.mxu0 }
 0x19e   : > { %v726_v21 = vpop.f32.mrf.mxu0 }
 0x19f   : > { %v727_v22 = vadd.f32 %v726_v21, %v725_v19  ;;  %506 = sbr.rel (%p689_p1) target bundleno = 450 (0x1c2), region = 36 }
 0x1a1   : > { %v501_v23 = vadd.f32 %v727_v22, %v430_v20 }
 0x1a3   : > { %502 = vst [vmem:[#allocation2] sm:$0xf] %v501_v23 }
 0x1aa   : > { %v509_v24 = vld [vmem:[#allocation2 + $0x2] sm:$0x1]  ;;  %v510_v25 = vld [vmem:[#allocation2 + $0x3] sm:$0x1]  ;;  %v507_v28 = vld [vmem:[#allocation2] sm:$0x1] }
 0x1ab   : > { %v512_v26 = vmax.f32 %v509_v24, 1.0  ;;  %v517_v27 = vmax.f32 %v510_v25, 1.0  ;;  %v508_v29 = vld [vmem:[#allocation2 + $0x1] sm:$0x1]  ;;  %vm511_vm0 = vcmp.gt.f32.partialorder %v509_v24, 0.0  ;;  %vm516_vm3 = vcmp.gt.f32.partialorder %v510_v25, 0.0 }
 0x1ad   : > { %804 = vrcp.f32 %v512_v26 }
 0x1ae   : > { %806 = vrcp.f32 %v517_v27 }
 0x1ba   : > { %v805_v30 = vpop.eup %804 }
 0x1bb   : > { %v807_v31 = vpop.eup %806  ;;  %v514_v32 = vmul.f32 %v805_v30, %v507_v28 }
 0x1bc   : > { %v519_v33 = vmul.f32 %v807_v31, %v508_v29 }
 0x1bd   : > { %v515_v34 = vsel %vm511_vm0, %v514_v32, 0.0 }
 0x1be   : > { %v520_v35 = vsel %vm516_vm3, %v519_v33, 0.0 }
 0x1bf   : > { %v521_v36 = vadd.f32 %v520_v35, %v515_v34 }
 0x1c1   : > { %522 = vst [vmem:[%s1005_s17] sm:$0x1] %v521_v36 }
 0x1c2 PF: > { %s690_s12 = sshll.u32 %s888_s13, 4  ;;  %s536_s28 = sshll.u32 %s1005_s17, 4  ;;  %s537_s28 = int_to_ptr.vmem [resolvable:$true] %s536_s28 }
 0x1c3   : > { %s534_s27 = scalar_lea.hbm %s1162_s2, %s690_s12  ;;  %s524_s29 = scalar_lea.sflag [#allocation4], %s163_s26 }
 0x1c4   : > { %s808_s30 = scalar_lea.vmem %s537_s28, 16  ;;  %s905_s3 = smov [#allocation3]  }
 0x1c5   : > { %p809_p2 = scmp.ne.s32.totalorder %s537_s28, %s808_s30  ;;  %s812_s4 = sshll.u32 %s905_s3, 4  ;;  %s813_s4 = int_to_ptr.vmem [resolvable:$false] %s812_s4 }
 0x1c6   : > { %s814_s5 = scalar_lea.vmem %s813_s4, 32  ;;  %p815_p6 = scmp.lt.s32.totalorder %s537_s28, %s813_s4 }
 0x1c7   : > { %p810_p4 = pnand %p809_p2, %p970_p3  ;;  %p816_p7 = scmp.lt.s32.totalorder %s814_s5, %s808_s30 }
 0x1c9   : > { %p811_p5 = pneg %p810_p4  ;;  %p817_p8 = por %p816_p7, %p815_p6 }
 0x1cb   : > { %p818_p10 = pnand %p817_p8, %p811_p5 }
 0x1cd   : > { %821 = shalt.err (!%p818_p10)
}
 0x1ce   : > { %s822_s13 = scalar_lea.hbm %s534_s27, 16  ;;  %s826_s7 = scalar_lea.hbm %s1162_s2, 32 }
 0x1cf   : > { %p823_p11 = scmp.ne.s32.totalorder %s534_s27, %s822_s13  ;;  %p827_p0 = scmp.lt.s32.totalorder %s534_s27, %s1162_s2 }
 0x1d0   : > { %p828_p1 = scmp.lt.s32.totalorder %s826_s7, %s822_s13 }
 0x1d1   : > { %p824_p12 = pnand %p823_p11, %p970_p3 }
 0x1d2   : > { %p829_p2 = por %p828_p1, %p827_p0 }
 0x1d3   : > { %p825_p13 = pneg %p824_p12 }
 0x1d5   : > { %p830_p4 = pnand %p829_p2, %p825_p13 }
 0x1d7   : > { %833 = shalt.err (!%p830_p4)
}
 0x1d8   : > { %728 = dma.vmem_to_hbm [thread:$0]  (%p970_p3), %s537_s28, 16, %s534_s27, %s524_s29  }
 0x1d9 PF: > { %p734_p5 = scmp.ge.s32.totalorder %s900_s16, 2  ;;  %s548_s18 = sand.u32 1, %s872_s9  }
 0x1da   : > { %s549_s12 = scalar_lea.sflag [#allocation4], %s548_s18 }
 0x1db   : > { %p731_p6 = pnand %p734_p5, %p980_p9 }
 0x1dd   : > { %p732_p7 = pneg %p731_p6 }
 0x1df   : > { %867 = dma.done.wait (%p732_p7), %s549_s12, 16  }
 0x1e0   : > { %869 = vsyncadd (%p732_p7), %s549_s12, 4294967280  ;;  %s15_s16 = sadd.s32 1, %s900_s16   ;;  %s1165_s9 = smov %s876_s10 }
 0x1e1   : > { %p12_p8 = scmp.ge.s32.totalorder %s15_s16, 10   ;;  %s1166_s10 = smov %s880_s11 }
 0x1e2   : > { %s1167_s11 = smov %s988_s25  ;;  %s1168_s12 = smov %s892_s14 }
 0x1e3   : > { %s1169_s13 = smov %s896_s15  ;;  %s1170_s14 = smov %s1173_s19 }
 0x1e4   : > { %s1171_s15 = smov %s1177_s20  ;;  %14 = sbr.rel (!%p12_p8) target bundleno = 5 (0x5), region = 74 }
 0x1e9   :  { %553 = vsyncpa [#allocation4], 1 }
 0x1ea   :  { %555 = vsyncpa [#allocation4 + $0x1], 1 }

</bundles_post_ra>
